<compile_context>
chip_gen: v7x
topology: tpu7x:2x2x1
jax: 0.10.0
libtpu: 0.0.40
codegen_flags: <defaults>
</compile_context>

<pallas_src>
import jax
import jax.numpy as jnp
from jax.experimental import pallas as pl
from jax.experimental.pallas import tpu as pltpu

_LANES = 128
_MAX_TILE_ROWS = 4096                    # (4096,128) f32 = 2 MiB/block; 2 inputs x 2 bufs = 8 MiB
_VMEM_LIMIT_BYTES = 32 * 1024 * 1024     # covers v5e's 16 MiB scoped default; fine on v6e/v7x
_NUM_PARTS = 2                           # leading "parallel" axis (megacore sharding on multi-TC)
# TODO(synk): if plain "parallel" does not actually shard across the two v7x TensorCores,
# switch the leading axis to pltpu.CORE_PARALLEL (or pl.core_map); kept "parallel" for safety.


def _make_iou_kernel(tiles_per_part, n_tiles, n_full_tiles, ragged_rows):
    """Builds the kernel with all tiling parameters baked in statically."""

    def kernel(logits_ref, gt_ref, inter_ref, union_ref):
        c = pl.program_id(0)            # partition ("parallel") index
        j = pl.program_id(1)            # tile index within this partition ("arbitrary")
        t = c * tiles_per_part + j      # global tile index

        # Zero this partition's tiny resident accumulators on its first inner step.
        @pl.when(j == 0)
        def _():
            inter_ref[...] = jnp.zeros_like(inter_ref)
            union_ref[...] = jnp.zeros_like(union_ref)

        def accumulate(valid):
            # sigmoid(x) > 0.5  <=>  x > 0  (bit-exact; no EUP transcendental needed).
            preds = logits_ref[...] > 0
            gts = gt_ref[...] > 0                 # groundtruth assumed exactly 0 or 1
            inter = jnp.logical_and(preds, gts)
            union = jnp.logical_or(preds, gts)
            if valid is not None:
                inter = jnp.logical_and(inter, valid)
                union = jnp.logical_and(union, valid)
            # Per-tile partial reduction (axis 0) into (1,128) int32 accumulators: pure VALU
            # adds plus one cross-sublane reduce per tile; accumulator touched once per tile.
            inter_ref[...] += jnp.sum(inter.astype(jnp.int32), axis=0, keepdims=True)
            union_ref[...] += jnp.sum(union.astype(jnp.int32), axis=0, keepdims=True)

        # Fast path: interior (fully valid) tiles — no row mask on the hot path.
        @pl.when(t < n_full_tiles)
        def _():
            accumulate(None)

        if ragged_rows:
            # Exactly one statically-known boundary tile has rows past the end of the array
            # (Pallas edge-block padding is garbage) — mask only that tile.
            @pl.when(t == n_full_tiles)
            def _():
                local_row = jax.lax.broadcasted_iota(jnp.int32, logits_ref.shape, 0)
                accumulate(local_row < ragged_rows)

        # Overflow steps (t >= n_tiles, only when tiles don't split evenly across partitions)
        # fall through both branches and contribute nothing.

    return kernel


def iou(logits: jax.Array, groundtruths: jax.Array) -> jax.Array:
    """Pallas TPU forward of the IOU module: sum(pred & gt) / sum(pred | gt)."""
    # TODO(synk): the PyTorch `assert torch.all((gt == 0) | (gt == 1))` is a host-side runtime
    # check and is not reproduced in-kernel (values are assumed to be exactly 0/1).
    flat_l = jnp.ravel(logits)
    flat_g = jnp.ravel(groundtruths)     # keep native dtypes; compares happen in-kernel
    n = flat_l.shape[0]

    lane_pad = (-n) % _LANES
    if lane_pad:
        # TODO(synk): this pad materializes a copy of both inputs (extra HBM pass); if
        # numel % 128 != 0 is a common case, handle the lane-ragged tail in-kernel instead.
        flat_l = jnp.pad(flat_l, (0, lane_pad))   # zeros are neutral (pred=0, gt=0)
        flat_g = jnp.pad(flat_g, (0, lane_pad))

    rows = (n + lane_pad) // _LANES
    l2d = flat_l.reshape(rows, _LANES)   # contiguous reshape, lane-dense layout
    g2d = flat_g.reshape(rows, _LANES)

    # Largest tile that fits comfortably in VMEM; single full-array tile for small inputs.
    tile_rows = rows if rows <= _MAX_TILE_ROWS else _MAX_TILE_ROWS
    n_tiles = (rows + tile_rows - 1) // tile_rows
    n_full_tiles = rows // tile_rows     # tiles with no out-of-range rows
    ragged_rows = rows % tile_rows       # valid rows in the single boundary tile, if any

    num_parts = _NUM_PARTS if n_tiles >= _NUM_PARTS else 1
    tiles_per_part = (n_tiles + num_parts - 1) // num_parts

    def in_map(c, j):
        # Clamp the (at most one) overflow step to a valid block; its accumulation is skipped
        # in-kernel, so the re-fetched data is never counted.
        return (jnp.minimum(c * tiles_per_part + j, n_tiles - 1), 0)

    def out_map(c, j):
        return (c, 0, 0)

    kernel = _make_iou_kernel(tiles_per_part, n_tiles, n_full_tiles, ragged_rows)

    inter_out, union_out = pl.pallas_call(
        kernel,
        out_shape=(
            jax.ShapeDtypeStruct((num_parts, 1, _LANES), jnp.int32),
            jax.ShapeDtypeStruct((num_parts, 1, _LANES), jnp.int32),
        ),
        grid_spec=pltpu.PrefetchScalarGridSpec(
            num_scalar_prefetch=0,
            grid=(num_parts, tiles_per_part),
            in_specs=[
                pl.BlockSpec((tile_rows, _LANES), in_map),
                pl.BlockSpec((tile_rows, _LANES), in_map),
            ],
            out_specs=(
                pl.BlockSpec((None, 1, _LANES), out_map),   # kernel sees (1, 128)
                pl.BlockSpec((None, 1, _LANES), out_map),
            ),
        ),
        compiler_params=pltpu.CompilerParams(
            dimension_semantics=("parallel", "arbitrary"),
            vmem_limit_bytes=_VMEM_LIMIT_BYTES,
        ),
    )(l2d, g2d)

    # Single tiny cross-lane reduction + divide in the wrapper (exact int32 counts).
    # TODO(synk): int32 totals overflow past ~2^31 elements; promote to int64 (needs x64).
    inter = jnp.sum(inter_out)
    union = jnp.sum(union_out)
    # NOTE: union == 0 yields NaN (0/0), matching the PyTorch module's behavior.
    return inter.astype(jnp.float32) / union.astype(jnp.float32)


def _iou_reference(logits, groundtruths):
    pred = (jax.nn.sigmoid(logits) > 0.5).astype(jnp.int32)
    gt = groundtruths.astype(jnp.int32)
    inter = jnp.sum(pred & gt)
    union = jnp.sum(pred | gt)
    return inter.astype(jnp.float32) / union.astype(jnp.float32)


if __name__ == "__main__":
    key = jax.random.PRNGKey(0)
    k1, k2 = jax.random.split(key)

    # Segmentation-style metric inputs: (B, C, H, W)
    logits = jax.random.normal(k1, (2, 4, 16, 16), dtype=jnp.float32)
    groundtruths = (jax.random.uniform(k2, (2, 4, 16, 16)) > 0.5).astype(jnp.float32)

    result = iou(logits, groundtruths)
    jax.block_until_ready(result)

    ref = _iou_reference(logits, groundtruths)
    assert jnp.allclose(result, ref, atol=1e-6), (result, ref)
    print("KERNEL_OK")
</pallas_src>

<mosaic_0001>
module attributes {stable_mosaic.version = 11 : i64} {
  func.func @kernel(%arg0: i32, %arg1: i32, %arg2: memref<16x128xf32, #tpu.memory_space<vmem>>, %arg3: memref<16x128xf32, #tpu.memory_space<vmem>>, %arg4: memref<1x1x128xi32, #tpu.memory_space<vmem>>, %arg5: memref<1x1x128xi32, #tpu.memory_space<vmem>>) attributes {dimension_semantics = [#tpu.dimension_semantics<parallel>, #tpu.dimension_semantics<arbitrary>], iteration_bounds = array<i64: 1, 1>, scalar_prefetch = 0 : i64, scratch_operands = 0 : i64, tpu.core_type = #tpu.core_type<tc>, window_params = [{transform_indices = @transform_0, window_bounds = array<i64: 16, 128>}, {transform_indices = @transform_1, window_bounds = array<i64: 16, 128>}, {transform_indices = @transform_2, window_bounds = array<i64: 1, 1, 128>}, {transform_indices = @transform_3, window_bounds = array<i64: 1, 1, 128>}]} {
    %c1_i32 = arith.constant 1 : i32
    %0 = arith.muli %arg0, %c1_i32 : i32
    %1 = arith.addi %0, %arg1 : i32
    %c0_i32 = arith.constant 0 : i32
    %2 = arith.cmpi eq, %arg1, %c0_i32 : i32
    %3 = arith.extui %2 : i1 to i32
    %c0_i32_0 = arith.constant 0 : i32
    %4 = arith.cmpi ne, %3, %c0_i32_0 : i32
    scf.if %4 {
      %c0_i32_3 = arith.constant 0 : i32
      %8 = vector.broadcast %c0_i32_3 : i32 to vector<1x128xi32>
      %c0 = arith.constant 0 : index
      %c0_4 = arith.constant 0 : index
      %c0_5 = arith.constant 0 : index
      %9 = vector.load %arg4[%c0, %c0_4, %c0_5] : memref<1x1x128xi32, #tpu.memory_space<vmem>>, vector<1x1x128xi32>
      %10 = vector.shape_cast %9 : vector<1x1x128xi32> to vector<1x128xi32>
      %11 = vector.shape_cast %8 : vector<1x128xi32> to vector<1x1x128xi32>
      tpu.vector_store %arg4[%c0, %c0_4, %c0_5], %11 {strides = array<i32>} : memref<1x1x128xi32, #tpu.memory_space<vmem>>, vector<1x1x128xi32>,
      %c0_i32_6 = arith.constant 0 : i32
      %12 = vector.broadcast %c0_i32_6 : i32 to vector<1x128xi32>
      %c0_7 = arith.constant 0 : index
      %c0_8 = arith.constant 0 : index
      %c0_9 = arith.constant 0 : index
      %13 = vector.load %arg5[%c0_7, %c0_8, %c0_9] : memref<1x1x128xi32, #tpu.memory_space<vmem>>, vector<1x1x128xi32>
      %14 = vector.shape_cast %13 : vector<1x1x128xi32> to vector<1x128xi32>
      %15 = vector.shape_cast %12 : vector<1x128xi32> to vector<1x1x128xi32>
      tpu.vector_store %arg5[%c0_7, %c0_8, %c0_9], %15 {strides = array<i32>} : memref<1x1x128xi32, #tpu.memory_space<vmem>>, vector<1x1x128xi32>,
    } else {
    }
    %c1_i32_1 = arith.constant 1 : i32
    %5 = arith.cmpi slt, %1, %c1_i32_1 : i32
    %6 = arith.extui %5 : i1 to i32
    %c0_i32_2 = arith.constant 0 : i32
    %7 = arith.cmpi ne, %6, %c0_i32_2 : i32
    scf.if %7 {
      %c0 = arith.constant 0 : index
      %c0_3 = arith.constant 0 : index
      %8 = vector.load %arg2[%c0, %c0_3] : memref<16x128xf32, #tpu.memory_space<vmem>>, vector<16x128xf32>
      %cst = arith.constant 0.000000e+00 : f32
      %9 = vector.broadcast %cst : f32 to vector<16x128xf32>
      %10 = arith.cmpf ogt, %8, %9 : vector<16x128xf32>
      %c0_4 = arith.constant 0 : index
      %c0_5 = arith.constant 0 : index
      %11 = vector.load %arg3[%c0_4, %c0_5] : memref<16x128xf32, #tpu.memory_space<vmem>>, vector<16x128xf32>
      %cst_6 = arith.constant 0.000000e+00 : f32
      %12 = vector.broadcast %cst_6 : f32 to vector<16x128xf32>
      %13 = arith.cmpf ogt, %11, %12 : vector<16x128xf32>
      %14 = arith.andi %10, %13 : vector<16x128xi1>
      %15 = arith.ori %10, %13 : vector<16x128xi1>
      %c0_7 = arith.constant 0 : index
      %c0_8 = arith.constant 0 : index
      %c0_9 = arith.constant 0 : index
      %16 = vector.load %arg4[%c0_7, %c0_8, %c0_9] : memref<1x1x128xi32, #tpu.memory_space<vmem>>, vector<1x1x128xi32>
      %17 = vector.shape_cast %16 : vector<1x1x128xi32> to vector<1x128xi32>
      %18 = arith.extui %14 : vector<16x128xi1> to vector<16x128xi32>
      %cst_10 = arith.constant dense<0> : vector<128xi32>
      %19 = vector.multi_reduction <add>, %18, %cst_10 [0] : vector<16x128xi32> to vector<128xi32>
      %20 = vector.shape_cast %19 : vector<128xi32> to vector<1x128xi32>
      %21 = arith.addi %17, %20 : vector<1x128xi32>
      %c0_11 = arith.constant 0 : index
      %c0_12 = arith.constant 0 : index
      %c0_13 = arith.constant 0 : index
      %22 = vector.load %arg4[%c0_11, %c0_12, %c0_13] : memref<1x1x128xi32, #tpu.memory_space<vmem>>, vector<1x1x128xi32>
      %23 = vector.shape_cast %22 : vector<1x1x128xi32> to vector<1x128xi32>
      %24 = vector.shape_cast %21 : vector<1x128xi32> to vector<1x1x128xi32>
      tpu.vector_store %arg4[%c0_11, %c0_12, %c0_13], %24 {strides = array<i32>} : memref<1x1x128xi32, #tpu.memory_space<vmem>>, vector<1x1x128xi32>,
      %c0_14 = arith.constant 0 : index
      %c0_15 = arith.constant 0 : index
      %c0_16 = arith.constant 0 : index
      %25 = vector.load %arg5[%c0_14, %c0_15, %c0_16] : memref<1x1x128xi32, #tpu.memory_space<vmem>>, vector<1x1x128xi32>
      %26 = vector.shape_cast %25 : vector<1x1x128xi32> to vector<1x128xi32>
      %27 = arith.extui %15 : vector<16x128xi1> to vector<16x128xi32>
      %cst_17 = arith.constant dense<0> : vector<128xi32>
      %28 = vector.multi_reduction <add>, %27, %cst_17 [0] : vector<16x128xi32> to vector<128xi32>
      %29 = vector.shape_cast %28 : vector<128xi32> to vector<1x128xi32>
      %30 = arith.addi %26, %29 : vector<1x128xi32>
      %c0_18 = arith.constant 0 : index
      %c0_19 = arith.constant 0 : index
      %c0_20 = arith.constant 0 : index
      %31 = vector.load %arg5[%c0_18, %c0_19, %c0_20] : memref<1x1x128xi32, #tpu.memory_space<vmem>>, vector<1x1x128xi32>
      %32 = vector.shape_cast %31 : vector<1x1x128xi32> to vector<1x128xi32>
      %33 = vector.shape_cast %30 : vector<1x128xi32> to vector<1x1x128xi32>
      tpu.vector_store %arg5[%c0_18, %c0_19, %c0_20], %33 {strides = array<i32>} : memref<1x1x128xi32, #tpu.memory_space<vmem>>, vector<1x1x128xi32>,
    } else {
    }
    return
  }
  func.func @transform_0(%arg0: i32, %arg1: i32) -> (i32, i32) {
    %c1_i32 = arith.constant 1 : i32
    %0 = arith.muli %arg0, %c1_i32 : i32
    %1 = arith.addi %0, %arg1 : i32
    %c0_i32 = arith.constant 0 : i32
    %2 = arith.minsi %1, %c0_i32 : i32
    %c0_i32_0 = arith.constant 0 : i32
    %c0_i32_1 = arith.constant 0 : i32
    return %2, %c0_i32_0 : i32, i32
  }
  func.func @transform_1(%arg0: i32, %arg1: i32) -> (i32, i32) {
    %c1_i32 = arith.constant 1 : i32
    %0 = arith.muli %arg0, %c1_i32 : i32
    %1 = arith.addi %0, %arg1 : i32
    %c0_i32 = arith.constant 0 : i32
    %2 = arith.minsi %1, %c0_i32 : i32
    %c0_i32_0 = arith.constant 0 : i32
    %c0_i32_1 = arith.constant 0 : i32
    return %2, %c0_i32_0 : i32, i32
  }
  func.func @transform_2(%arg0: i32, %arg1: i32) -> (i32, i32, i32) {
    %c0_i32 = arith.constant 0 : i32
    %c0_i32_0 = arith.constant 0 : i32
    %c0_i32_1 = arith.constant 0 : i32
    return %arg0, %c0_i32, %c0_i32_0 : i32, i32, i32
  }
  func.func @transform_3(%arg0: i32, %arg1: i32) -> (i32, i32, i32) {
    %c0_i32 = arith.constant 0 : i32
    %c0_i32_0 = arith.constant 0 : i32
    %c0_i32_1 = arith.constant 0 : i32
    return %arg0, %c0_i32, %c0_i32_0 : i32, i32, i32
  }
}

</mosaic_0001>

<bundles_post_ra>
// kernel: tpu_custom_call.1
= control target key start
LH: loop header
LB: loop body
LE: loop exit
PB: predicated region body
PF: predicated region fallthrough
CT: control target
= control target key end

     0   :  { %9 = vsyncpa [#allocation3], 0  ;;  %s330_s0 = inlined_call_operand.hbm [shape: f32[16,128], index: 0, kind: input, shape index: {}]   ;;  %s331_s1 = inlined_call_operand.hbm [shape: f32[16,128], index: 1, kind: input, shape index: {}]   ;;  %s332_s2 = inlined_call_operand.hbm [shape: s32[1,1,128], index: 2, kind: output, shape index: {0}]   ;;  %s333_s3 = inlined_call_operand.hbm [shape: s32[1,1,128], index: 3, kind: output, shape index: {1}]  }
   0x1   :  { %10 = vsyncpa [#allocation6], 0 }
   0x2   :  { %11 = vsyncpa [#allocation4], 0 }
   0x3   :  { %12 = vsyncpa [#allocation9], 0  ;;  %s247_s12 = smov [#allocation2]   ;;  %s151_s16 = scalar_lea.hbm %s330_s0, 256 }
   0x4   :  { %s24_s13 = sshll.u32 %s247_s12, 4  ;;  %p152_p0 = scmp.ne.s32.totalorder %s330_s0, %s151_s16  ;;  %s25_s13 = int_to_ptr.vmem [resolvable:$true] %s24_s13 }
   0x5   :  { %p155_p1 = scmp.lt.u32.totalorder %s151_s16, %s330_s0 }
   0x7   :  { %p157_p2 = pnand %p155_p1, %p152_p0 }
   0x9   :  { %160 = shalt.err (!%p157_p2)
}
   0xa   :  { %s161_s21 = scalar_lea.vmem %s25_s13, 256  ;;  %p166_p4 = scmp.lt.s32.totalorder %s25_s13, %s25_s13 }
   0xb   :  { %p162_p3 = scmp.ne.s32.totalorder %s25_s13, %s161_s21  ;;  %p167_p5 = scmp.lt.s32.totalorder %s161_s21, %s161_s21 }
   0xd   :  { %p168_p6 = por %p167_p5, %p166_p4 }
   0xf   :  { %p169_p7 = pnand %p168_p6, %p162_p3 }
  0x11   :  { %172 = shalt.err (!%p169_p7)
}
  0x12   :  { %s248_s22 = smov 128   ;;  %s249_s23 = smov 8  }
  0x13   :  { %30 = dma.hbm_to_vmem [thread:$0]  %s330_s0, 256, %s25_s13, [#allocation3], %s248_s22, %s248_s22, %s249_s23  }
  0x14   :  { %s250_s26 = smov [#allocation5]   ;;  %s173_s30 = scalar_lea.hbm %s331_s1, 256 }
  0x15   :  { %s42_s27 = sshll.u32 %s250_s26, 4  ;;  %p174_p8 = scmp.ne.s32.totalorder %s331_s1, %s173_s30  ;;  %s43_s27 = int_to_ptr.vmem [resolvable:$true] %s42_s27 }
  0x16   :  { %p177_p9 = scmp.lt.u32.totalorder %s173_s30, %s331_s1 }
  0x18   :  { %p179_p10 = pnand %p177_p9, %p174_p8 }
  0x1a   :  { %182 = shalt.err (!%p179_p10)
}
  0x1b   :  { %s183_s8 = scalar_lea.vmem %s43_s27, 256  ;;  %p188_p12 = scmp.lt.s32.totalorder %s43_s27, %s43_s27 }
  0x1c   :  { %p184_p11 = scmp.ne.s32.totalorder %s43_s27, %s183_s8  ;;  %p189_p13 = scmp.lt.s32.totalorder %s183_s8, %s183_s8 }
  0x1e   :  { %p190_p0 = por %p189_p13, %p188_p12 }
  0x20   :  { %p191_p1 = pnand %p190_p0, %p184_p11 }
  0x22   :  { %194 = shalt.err (!%p191_p1)
}
  0x23   :  { %48 = dma.hbm_to_vmem [thread:$0]  %s331_s1, 256, %s43_s27, [#allocation6], %s248_s22, %s248_s22, %s249_s23  }
  0x24   :  { %239 = dma.done.wait [#allocation3], 256  }
  0x25   :  { %240 = vsyncadd [#allocation3], 4294967040 }
  0x26   :  { %241 = dma.done.wait [#allocation6], 256  }
  0x27   :  { %242 = vsyncadd [#allocation6], 4294967040  ;;  %v251_v0 = vmov 0   ;;  %v74_v1 = vld [vmem:[#allocation2] sm:$0xff]  ;;  %v75_v2 = vld [vmem:[#allocation2 + $0x8] sm:$0xff]  ;;  %s252_s1 = smov [#allocation7]  }
  0x28   :  { %68 = vst [vmem:[#allocation7] sm:$0x1] %v251_v0  ;;  %69 = vst [vmem:[#allocation8] sm:$0x1] %v251_v0  ;;  %v78_v3 = vld [vmem:[#allocation5] sm:$0xff]  ;;  %vm76_vm0 = vcmp.gt.f32.partialorder %v74_v1, 0.0 }
  0x29   :  { %vm77_vm1 = vcmp.gt.f32.partialorder %v75_v2, 0.0  ;;  %v79_v4 = vld [vmem:[#allocation5 + $0x8] sm:$0xff]  ;;  %vm80_vm2 = vcmp.gt.f32.partialorder %v78_v3, 0.0  ;;  %s116_s10 = sshll.u32 %s252_s1, 4  ;;  %s253_s11 = smov [#allocation8]   ;;  %s117_s10 = int_to_ptr.vmem [resolvable:$true] %s116_s10 }
  0x2a   :  { %vm81_vm3 = vcmp.gt.f32.partialorder %v79_v4, 0.0  ;;  %vm82_vm4 = vmand %vm76_vm0, %vm80_vm2  ;;  %s126_s12 = sshll.u32 %s253_s11, 4  ;;  %s195_s13 = scalar_lea.vmem %s117_s10, 16  ;;  %s298_s12 = int_to_ptr.vmem [resolvable:$true] %s126_s12 }
  0x2b   :  { %vm83_vm5 = vmand %vm77_vm1, %vm81_vm3  ;;  %v87_v5 = vsel %vm82_vm4, 1, %v251_v0  ;;  %p196_p2 = scmp.ne.s32.totalorder %s117_s10, %s195_s13  ;;  %s199_s14 = scalar_lea.vmem %s117_s10, 32 }
  0x2c   :  { %v88_v6 = vsel %vm83_vm5, 1, %v251_v0  ;;  %vm84_vm6 = vmor %vm76_vm0, %vm80_vm2  ;;  %p200_p3 = scmp.lt.s32.totalorder %s117_s10, %s117_s10  ;;  %p201_p4 = scmp.lt.s32.totalorder %s199_s14, %s195_s13 }
  0x2d   :  { %v89_v7 = vadd.s32 %v88_v6, %v87_v5  ;;  %vm85_vm7 = vmor %vm77_vm1, %vm81_vm3  ;;  %v99_v8 = vsel %vm84_vm6, 1, %v251_v0 }
  0x2e   :  { %v100_v9 = vsel %vm85_vm7, 1, %v251_v0  ;;  %p202_p5 = por %p201_p4, %p200_p3 }
  0x2f   :  { %v90_v10 = vrot.slane %v89_v7, 4  ;;  %v101_v11 = vadd.s32 %v100_v9, %v99_v8  ;;  %v86_v20 = vld [vmem:[#allocation7] sm:$0x1]  ;;  %v98_v23 = vld [vmem:[#allocation8] sm:$0x1] }
  0x30   :  { %p203_p6 = pnand %p202_p5, %p196_p2 }
  0x31   :  { %v91_v12 = vadd.s32 %v90_v10, %v89_v7  ;;  %v102_v13 = vrot.slane %v101_v11, 4 }
  0x33   :  { %v92_v14 = vrot.slane %v91_v12, 2  ;;  %v103_v15 = vadd.s32 %v102_v13, %v101_v11 }
  0x35   :  { %v93_v16 = vadd.s32 %v92_v14, %v91_v12  ;;  %v104_v17 = vrot.slane %v103_v15, 2 }
  0x37   :  { %v94_v18 = vrot.slane %v93_v16, 1  ;;  %v105_v19 = vadd.s32 %v104_v17, %v103_v15 }
  0x39   :  { %v95_v21 = vadd.s32 %v94_v18, %v93_v16  ;;  %v106_v22 = vrot.slane %v105_v19, 1 }
  0x3b   :  { %v96_v24 = vadd.s32 %v95_v21, %v86_v20  ;;  %v107_v25 = vadd.s32 %v106_v22, %v105_v19 }
  0x3d   :  { %97 = vst [vmem:[#allocation7] sm:$0x1] %v96_v24  ;;  %v108_v26 = vadd.s32 %v107_v25, %v98_v23 }
  0x3e   :  { %206 = shalt.err (!%p203_p6)
}
  0x3f   :  { %s207_s17 = scalar_lea.hbm %s332_s2, 16 }
  0x40   :  { %p208_p7 = scmp.ne.s32.totalorder %s332_s2, %s207_s17  ;;  %p211_p8 = scmp.lt.u32.totalorder %s207_s17, %s332_s2 }
  0x42   :  { %p213_p9 = pnand %p211_p8, %p208_p7 }
  0x44   :  { %216 = shalt.err (!%p213_p9)
}
  0x45   :  { %119 = dma.vmem_to_hbm [thread:$0]  %s117_s10, 16, %s332_s2, [#allocation4]   ;;  %109 = vst [vmem:[#allocation8] sm:$0x1] %v108_v26 }
  0x46   :  { %s217_s24 = scalar_lea.vmem %s298_s12, 16  ;;  %s221_s25 = scalar_lea.vmem %s298_s12, 32 }
  0x47   :  { %p218_p10 = scmp.ne.s32.totalorder %s298_s12, %s217_s24  ;;  %p222_p11 = scmp.lt.s32.totalorder %s298_s12, %s298_s12 }
  0x48   :  { %p223_p12 = scmp.lt.s32.totalorder %s221_s25, %s217_s24 }
  0x4a   :  { %p224_p13 = por %p223_p12, %p222_p11 }
  0x4c   :  { %p225_p0 = pnand %p224_p13, %p218_p10 }
  0x4e   :  { %228 = shalt.err (!%p225_p0)
}
  0x4f   :  { %s229_s28 = scalar_lea.hbm %s333_s3, 16 }
  0x50   :  { %p230_p1 = scmp.ne.s32.totalorder %s333_s3, %s229_s28  ;;  %p233_p2 = scmp.lt.u32.totalorder %s229_s28, %s333_s3 }
  0x52   :  { %p235_p3 = pnand %p233_p2, %p230_p1 }
  0x54   :  { %238 = shalt.err (!%p235_p3)
}
  0x55   :  { %129 = dma.vmem_to_hbm [thread:$0]  %s298_s12, 16, %s333_s3, [#allocation9]  }
  0x56   :  { %243 = dma.done.wait [#allocation4], 16  }
  0x57   :  { %244 = vsyncadd [#allocation4], 4294967280 }
  0x58   :  { %245 = dma.done.wait [#allocation9], 16  }
  0x59   :  { %246 = vsyncadd [#allocation9], 4294967280 }
  0x5a   :  { %136 = vsyncpa [#allocation3], 1 }
  0x5b   :  { %137 = vsyncpa [#allocation6], 1 }
  0x5c   :  { %138 = vsyncpa [#allocation4], 1 }
  0x5d   :  { %139 = vsyncpa [#allocation9], 1 }

</bundles_post_ra>
